<compile_context>
chip_gen: v7x
topology: tpu7x:2x2x1
jax: 0.10.0
libtpu: 0.0.40
codegen_flags: <defaults>
</compile_context>

<pallas_src>
import functools
import math

import jax
import jax.numpy as jnp
from jax.experimental import pallas as pl
from jax.experimental.pallas import tpu as pltpu

_HALF_LOG_2PI = 0.5 * math.log(2.0 * math.pi)


def _sac_policy_kernel(state_ref, w1_ref, b1_ref, w2_ref, b2_ref,
                       whead_ref, bhead_ref, eps_ref,
                       action_ref, logp_ref, *, action_dim):
    # All activations are [features, TB]: batch on the 128-lane axis.
    x = state_ref[...]                                               # [S, TB]

    # l1 + ReLU
    h1 = jnp.dot(w1_ref[...], x, preferred_element_type=jnp.float32) + b1_ref[...]
    h1 = jnp.maximum(h1, 0.0)                                        # [H, TB]

    # l2 + ReLU
    h2 = jnp.dot(w2_ref[...], h1, preferred_element_type=jnp.float32) + b2_ref[...]
    h2 = jnp.maximum(h2, 0.0)                                        # [H, TB]

    # Fused mu | std head: one [2A, H] x [H, TB] matmul, slice along sublanes.
    head = (jnp.dot(whead_ref[...], h2, preferred_element_type=jnp.float32)
            + bhead_ref[...])                                        # [2A, TB]
    mu = head[:action_dim, :]
    pre_std = head[action_dim:, :]

    # softplus (numerically stable): log1p(exp(-|x|)) + max(x, 0)
    std = jnp.log1p(jnp.exp(-jnp.abs(pre_std))) + jnp.maximum(pre_std, 0.0)

    # rsample: z = mu + std * eps,  eps ~ N(0, 1)
    eps = eps_ref[...]                                               # [A, TB]
    z = mu + std * eps

    # Normal(mu, std).log_prob(z); (z - mu)/std == eps by construction,
    # so skip the divide (also avoids a 0/0 if std underflows).
    log_prob = -0.5 * eps * eps - jnp.log(std) - _HALF_LOG_2PI

    # tanh squash
    action = jnp.tanh(z)

    # Matches the PyTorch source exactly (tanh applied to the already
    # squashed `action`): log(1 - tanh(action)^2 + 1e-7)
    t2 = jnp.tanh(action)
    log_prob = log_prob - jnp.log(1.0 - t2 * t2 + 1e-7)

    action_ref[...] = action                                         # [A, TB]
    logp_ref[...] = jnp.sum(log_prob, axis=0, keepdims=True)         # [1, TB]


def _round_up(x, m):
    return ((x + m - 1) // m) * m


@functools.partial(jax.jit, static_argnames=("max_action", "batch_tile"))
def sac_policy_forward(state, kparams, eps, max_action=1.0, batch_tile=1024):
    """Pallas implementation of SACPolicyNet.forward.

    state:   [B, state_total_len] float32
    kparams: output of prepare_params() — weights [out, in], biases [out, 1],
             with the mu/std head pre-fused into w_head [2A, H] / b_head [2A, 1].
    eps:     [B, action_dim] float32 standard-normal noise (for rsample)
    returns: (action [B, action_dim], log_prob [B, 1])
    """
    del max_action  # stored on the module but unused in forward()
    B, S = state.shape
    H = kparams["w1"].shape[0]
    A = kparams["w_head"].shape[0] // 2

    # Batch tile: large (amortize per-step overhead, fill the 256-wide MXU on
    # v6e/v7x) but capped so big batches keep >= 2 grid steps for v7x's 2 TCs.
    TB = min(batch_tile, max(256, _round_up(-(-B // 2), 256)))
    B_pad = _round_up(B, TB)
    grid = (B_pad // TB,)

    # Layout plumbing: put the batch on the lane axis; pad to a whole tile.
    state_t = state.T                                                # [S, B]
    eps_t = eps.T                                                    # [A, B]
    if B_pad != B:
        pad = ((0, 0), (0, B_pad - B))
        state_t = jnp.pad(state_t, pad)
        eps_t = jnp.pad(eps_t, pad)

    kernel = functools.partial(_sac_policy_kernel, action_dim=A)

    def batch_spec(feat):
        # Batch-streamed tensors: tiled along the lane (batch) axis.
        return pl.BlockSpec((feat, TB), lambda i: (0, i))

    def const_spec(shape):
        # Weights / biases: same block every step -> stay VMEM-resident.
        return pl.BlockSpec(shape, lambda i: (0, 0))

    flops = 2 * B_pad * (S * H + H * H + H * 2 * A)
    transcendentals = 6 * B_pad * A  # exp, log1p, log, 2x tanh, log
    bytes_accessed = 4 * (B_pad * (S + A + A + 1)
                          + H * S + H + H * H + H + 2 * A * H + 2 * A)

    action_t, logp_t = pl.pallas_call(
        kernel,
        grid=grid,
        in_specs=[
            batch_spec(S),
            const_spec(kparams["w1"].shape), const_spec(kparams["b1"].shape),
            const_spec(kparams["w2"].shape), const_spec(kparams["b2"].shape),
            const_spec(kparams["w_head"].shape), const_spec(kparams["b_head"].shape),
            batch_spec(A),
        ],
        out_specs=(
            batch_spec(A),
            batch_spec(1),
        ),
        out_shape=(
            jax.ShapeDtypeStruct((A, B_pad), jnp.float32),   # action^T
            jax.ShapeDtypeStruct((1, B_pad), jnp.float32),   # log_prob^T
        ),
        compiler_params=pltpu.CompilerParams(
            dimension_semantics=("parallel",)),
        cost_estimate=pl.CostEstimate(
            flops=flops,
            transcendentals=transcendentals,
            bytes_accessed=bytes_accessed),
    )(state_t, kparams["w1"], kparams["b1"], kparams["w2"], kparams["b2"],
      kparams["w_head"], kparams["b_head"], eps_t)

    action = action_t.T[:B]          # [B, A]
    log_prob = logp_t.T[:B]          # [B, 1]
    return action, log_prob


def prepare_params(raw):
    """Fuse the mu/std heads once, outside the jitted forward.

    raw weights are in PyTorch nn.Linear layout: [out_features, in_features];
    biases are [out_features, 1].
    """
    return {
        "w1": raw["w1"], "b1": raw["b1"],
        "w2": raw["w2"], "b2": raw["b2"],
        "w_head": jnp.concatenate([raw["w_mu"], raw["w_std"]], axis=0),
        "b_head": jnp.concatenate([raw["b_mu"], raw["b_std"]], axis=0),
    }


def sac_policy_reference(state, raw, eps):
    """Pure-JAX reference (mirrors the PyTorch forward exactly)."""
    h1 = jax.nn.relu(state @ raw["w1"].T + raw["b1"].T)
    h2 = jax.nn.relu(h1 @ raw["w2"].T + raw["b2"].T)
    mu = h2 @ raw["w_mu"].T + raw["b_mu"].T
    std = jax.nn.softplus(h2 @ raw["w_std"].T + raw["b_std"].T)
    z = mu + std * eps
    log_prob = (-0.5 * ((z - mu) / std) ** 2 - jnp.log(std)
                - 0.5 * jnp.log(2.0 * jnp.pi))
    action = jnp.tanh(z)
    log_prob = log_prob - jnp.log(1.0 - jnp.tanh(action) ** 2 + 1e-7)
    return action, jnp.sum(log_prob, axis=-1, keepdims=True)


def init_params(key, state_total_len, hidden_dim, action_dim):
    """Deterministic synthetic init, PyTorch layout (weights [out, in], biases [out, 1])."""
    ks = jax.random.split(key, 8)

    def lin(kw, kb, fan_in, fan_out):
        bound = 1.0 / jnp.sqrt(fan_in)
        w = jax.random.uniform(kw, (fan_out, fan_in), jnp.float32, -bound, bound)
        b = jax.random.uniform(kb, (fan_out, 1), jnp.float32, -bound, bound)
        return w, b

    w1, b1 = lin(ks[0], ks[1], state_total_len, hidden_dim)
    w2, b2 = lin(ks[2], ks[3], hidden_dim, hidden_dim)
    w_mu, b_mu = lin(ks[4], ks[5], hidden_dim, action_dim)
    w_std, b_std = lin(ks[6], ks[7], hidden_dim, action_dim)
    return {
        "w1": w1, "b1": b1,
        "w2": w2, "b2": b2,
        "w_mu": w_mu, "b_mu": b_mu,
        "w_std": w_std, "b_std": b_std,
    }


if __name__ == "__main__":
    # Shapes consistent with the module's forward:
    #   state_total_len=16, hidden_dim=32, action_dim=4.
    # Batch of 200 exercises the padding path (TB is capped to 256 here).
    STATE_LEN, HIDDEN, ACTION, BATCH = 16, 32, 4, 200
    MAX_ACTION = 1.0

    root = jax.random.PRNGKey(0)
    k_params, k_state, k_eps = jax.random.split(root, 3)

    raw_params = init_params(k_params, STATE_LEN, HIDDEN, ACTION)
    kparams = prepare_params(raw_params)          # fuse mu|std head once
    state = jax.random.normal(k_state, (BATCH, STATE_LEN), jnp.float32)
    eps = jax.random.normal(k_eps, (BATCH, ACTION), jnp.float32)  # rsample noise

    action, log_prob = sac_policy_forward(state, kparams, eps,
                                          max_action=MAX_ACTION)
    jax.block_until_ready((action, log_prob))

    # Correctness checks against a pure-JAX reference.
    ref_action, ref_logp = sac_policy_reference(state, raw_params, eps)

    assert action.shape == (BATCH, ACTION)
    assert log_prob.shape == (BATCH, 1)
    assert bool(jnp.all(jnp.isfinite(action)))
    assert bool(jnp.all(jnp.isfinite(log_prob)))
    assert bool(jnp.all(jnp.abs(action) <= 1.0))
    assert bool(jnp.allclose(action, ref_action, atol=1e-5, rtol=1e-5))
    assert bool(jnp.allclose(log_prob, ref_logp, atol=1e-4, rtol=1e-4))

    print("KERNEL_OK")
</pallas_src>

<mosaic_0001>
module attributes {stable_mosaic.version = 11 : i64} {
  func.func @_sac_policy_kernel(%arg0: i32, %arg1: memref<16x256xf32, #tpu.memory_space<vmem>>, %arg2: memref<32x16xf32, #tpu.memory_space<vmem>>, %arg3: memref<32x1xf32, #tpu.memory_space<vmem>>, %arg4: memref<32x32xf32, #tpu.memory_space<vmem>>, %arg5: memref<32x1xf32, #tpu.memory_space<vmem>>, %arg6: memref<8x32xf32, #tpu.memory_space<vmem>>, %arg7: memref<8x1xf32, #tpu.memory_space<vmem>>, %arg8: memref<4x256xf32, #tpu.memory_space<vmem>>, %arg9: memref<4x256xf32, #tpu.memory_space<vmem>>, %arg10: memref<1x256xf32, #tpu.memory_space<vmem>>) attributes {dimension_semantics = [#tpu.dimension_semantics<parallel>], iteration_bounds = array<i64: 1>, scalar_prefetch = 0 : i64, scratch_operands = 0 : i64, tpu.core_type = #tpu.core_type<tc>, window_params = [{transform_indices = @transform_0, window_bounds = array<i64: 16, 256>}, {pipeline_mode = #tpu.pipeline_mode<synchronous>, transform_indices = @transform_1, window_bounds = array<i64: 32, 16>}, {pipeline_mode = #tpu.pipeline_mode<synchronous>, transform_indices = @transform_2, window_bounds = array<i64: 32, 1>}, {pipeline_mode = #tpu.pipeline_mode<synchronous>, transform_indices = @transform_3, window_bounds = array<i64: 32, 32>}, {pipeline_mode = #tpu.pipeline_mode<synchronous>, transform_indices = @transform_4, window_bounds = array<i64: 32, 1>}, {pipeline_mode = #tpu.pipeline_mode<synchronous>, transform_indices = @transform_5, window_bounds = array<i64: 8, 32>}, {pipeline_mode = #tpu.pipeline_mode<synchronous>, transform_indices = @transform_6, window_bounds = array<i64: 8, 1>}, {transform_indices = @transform_7, window_bounds = array<i64: 4, 256>}, {transform_indices = @transform_8, window_bounds = array<i64: 4, 256>}, {transform_indices = @transform_9, window_bounds = array<i64: 1, 256>}]} {
    %c0 = arith.constant 0 : index
    %c0_0 = arith.constant 0 : index
    %0 = vector.load %arg1[%c0, %c0_0] : memref<16x256xf32, #tpu.memory_space<vmem>>, vector<16x256xf32>
    %c0_1 = arith.constant 0 : index
    %c0_2 = arith.constant 0 : index
    %1 = vector.load %arg2[%c0_1, %c0_2] : memref<32x16xf32, #tpu.memory_space<vmem>>, vector<32x16xf32>
    %cst = arith.constant dense<0.000000e+00> : vector<32x256xf32>
    %2 = tpu.matmul %1, %0, %cst {dimension_numbers = #tpu.dot_dimension_numbers<[1], [0], [0], [1], [0, 0, 1, 1], [], []>} : vector<32x16xf32>, vector<16x256xf32>, vector<32x256xf32> -> vector<32x256xf32>
    %c0_3 = arith.constant 0 : index
    %c0_4 = arith.constant 0 : index
    %3 = vector.load %arg3[%c0_3, %c0_4] : memref<32x1xf32, #tpu.memory_space<vmem>>, vector<32x1xf32>
    %4 = vector.broadcast %3 : vector<32x1xf32> to vector<32x256xf32>
    %5 = arith.addf %2, %4 : vector<32x256xf32>
    %cst_5 = arith.constant 0.000000e+00 : f32
    %6 = vector.broadcast %cst_5 : f32 to vector<32x256xf32>
    %7 = arith.maximumf %5, %6 : vector<32x256xf32>
    %c0_6 = arith.constant 0 : index
    %c0_7 = arith.constant 0 : index
    %8 = vector.load %arg4[%c0_6, %c0_7] : memref<32x32xf32, #tpu.memory_space<vmem>>, vector<32x32xf32>
    %cst_8 = arith.constant dense<0.000000e+00> : vector<32x256xf32>
    %9 = tpu.matmul %8, %7, %cst_8 {dimension_numbers = #tpu.dot_dimension_numbers<[1], [0], [0], [1], [0, 0, 1, 1], [], []>} : vector<32x32xf32>, vector<32x256xf32>, vector<32x256xf32> -> vector<32x256xf32>
    %c0_9 = arith.constant 0 : index
    %c0_10 = arith.constant 0 : index
    %10 = vector.load %arg5[%c0_9, %c0_10] : memref<32x1xf32, #tpu.memory_space<vmem>>, vector<32x1xf32>
    %11 = vector.broadcast %10 : vector<32x1xf32> to vector<32x256xf32>
    %12 = arith.addf %9, %11 : vector<32x256xf32>
    %cst_11 = arith.constant 0.000000e+00 : f32
    %13 = vector.broadcast %cst_11 : f32 to vector<32x256xf32>
    %14 = arith.maximumf %12, %13 : vector<32x256xf32>
    %c0_12 = arith.constant 0 : index
    %c0_13 = arith.constant 0 : index
    %15 = vector.load %arg6[%c0_12, %c0_13] : memref<8x32xf32, #tpu.memory_space<vmem>>, vector<8x32xf32>
    %cst_14 = arith.constant dense<0.000000e+00> : vector<8x256xf32>
    %16 = tpu.matmul %15, %14, %cst_14 {dimension_numbers = #tpu.dot_dimension_numbers<[1], [0], [0], [1], [0, 0, 1, 1], [], []>} : vector<8x32xf32>, vector<32x256xf32>, vector<8x256xf32> -> vector<8x256xf32>
    %c0_15 = arith.constant 0 : index
    %c0_16 = arith.constant 0 : index
    %17 = vector.load %arg7[%c0_15, %c0_16] : memref<8x1xf32, #tpu.memory_space<vmem>>, vector<8x1xf32>
    %18 = vector.broadcast %17 : vector<8x1xf32> to vector<8x256xf32>
    %19 = arith.addf %16, %18 : vector<8x256xf32>
    %20 = vector.extract_strided_slice %19 {offsets = [0, 0], sizes = [4, 256], strides = [1, 1]} : vector<8x256xf32> to vector<4x256xf32>
    %21 = vector.extract_strided_slice %19 {offsets = [4, 0], sizes = [4, 256], strides = [1, 1]} : vector<8x256xf32> to vector<4x256xf32>
    %22 = math.absf %21 : vector<4x256xf32>
    %cst_17 = arith.constant 0.000000e+00 : f32
    %23 = vector.broadcast %cst_17 : f32 to vector<4x256xf32>
    %24 = arith.subf %23, %22 : vector<4x256xf32>
    %25 = math.exp %24 : vector<4x256xf32>
    %26 = math.log1p %25 : vector<4x256xf32>
    %cst_18 = arith.constant 0.000000e+00 : f32
    %27 = vector.broadcast %cst_18 : f32 to vector<4x256xf32>
    %28 = arith.maximumf %21, %27 : vector<4x256xf32>
    %29 = arith.addf %26, %28 : vector<4x256xf32>
    %c0_19 = arith.constant 0 : index
    %c0_20 = arith.constant 0 : index
    %30 = vector.load %arg8[%c0_19, %c0_20] : memref<4x256xf32, #tpu.memory_space<vmem>>, vector<4x256xf32>
    %31 = arith.mulf %29, %30 : vector<4x256xf32>
    %32 = arith.addf %20, %31 : vector<4x256xf32>
    %cst_21 = arith.constant -5.000000e-01 : f32
    %33 = vector.broadcast %cst_21 : f32 to vector<4x256xf32>
    %34 = arith.mulf %33, %30 : vector<4x256xf32>
    %35 = arith.mulf %34, %30 : vector<4x256xf32>
    %36 = math.log %29 : vector<4x256xf32>
    %37 = arith.subf %35, %36 : vector<4x256xf32>
    %cst_22 = arith.constant 0.918938517 : f32
    %38 = vector.broadcast %cst_22 : f32 to vector<4x256xf32>
    %39 = arith.subf %37, %38 : vector<4x256xf32>
    %40 = math.tanh %32 : vector<4x256xf32>
    %41 = math.tanh %40 : vector<4x256xf32>
    %42 = arith.mulf %41, %41 : vector<4x256xf32>
    %cst_23 = arith.constant 1.000000e+00 : f32
    %43 = vector.broadcast %cst_23 : f32 to vector<4x256xf32>
    %44 = arith.subf %43, %42 : vector<4x256xf32>
    %cst_24 = arith.constant 1.000000e-07 : f32
    %45 = vector.broadcast %cst_24 : f32 to vector<4x256xf32>
    %46 = arith.addf %44, %45 : vector<4x256xf32>
    %47 = math.log %46 : vector<4x256xf32>
    %48 = arith.subf %39, %47 : vector<4x256xf32>
    %c0_25 = arith.constant 0 : index
    %c0_26 = arith.constant 0 : index
    %49 = vector.load %arg9[%c0_25, %c0_26] : memref<4x256xf32, #tpu.memory_space<vmem>>, vector<4x256xf32>
    tpu.vector_store %arg9[%c0_25, %c0_26], %40 {strides = array<i32>} : memref<4x256xf32, #tpu.memory_space<vmem>>, vector<4x256xf32>,
    %cst_27 = arith.constant dense<0.000000e+00> : vector<256xf32>
    %50 = vector.multi_reduction <add>, %48, %cst_27 [0] : vector<4x256xf32> to vector<256xf32>
    %51 = vector.shape_cast %50 : vector<256xf32> to vector<1x256xf32>
    %c0_28 = arith.constant 0 : index
    %c0_29 = arith.constant 0 : index
    %52 = vector.load %arg10[%c0_28, %c0_29] : memref<1x256xf32, #tpu.memory_space<vmem>>, vector<1x256xf32>
    tpu.vector_store %arg10[%c0_28, %c0_29], %51 {strides = array<i32>} : memref<1x256xf32, #tpu.memory_space<vmem>>, vector<1x256xf32>,
    return
  }
  func.func @transform_0(%arg0: i32) -> (i32, i32) {
    %c0_i32 = arith.constant 0 : i32
    %c0_i32_0 = arith.constant 0 : i32
    return %c0_i32, %arg0 : i32, i32
  }
  func.func @transform_1(%arg0: i32) -> (i32, i32) {
    %c0_i32 = arith.constant 0 : i32
    %c0_i32_0 = arith.constant 0 : i32
    %c0_i32_1 = arith.constant 0 : i32
    return %c0_i32, %c0_i32_0 : i32, i32
  }
  func.func @transform_2(%arg0: i32) -> (i32, i32) {
    %c0_i32 = arith.constant 0 : i32
    %c0_i32_0 = arith.constant 0 : i32
    %c0_i32_1 = arith.constant 0 : i32
    return %c0_i32, %c0_i32_0 : i32, i32
  }
  func.func @transform_3(%arg0: i32) -> (i32, i32) {
    %c0_i32 = arith.constant 0 : i32
    %c0_i32_0 = arith.constant 0 : i32
    %c0_i32_1 = arith.constant 0 : i32
    return %c0_i32, %c0_i32_0 : i32, i32
  }
  func.func @transform_4(%arg0: i32) -> (i32, i32) {
    %c0_i32 = arith.constant 0 : i32
    %c0_i32_0 = arith.constant 0 : i32
    %c0_i32_1 = arith.constant 0 : i32
    return %c0_i32, %c0_i32_0 : i32, i32
  }
  func.func @transform_5(%arg0: i32) -> (i32, i32) {
    %c0_i32 = arith.constant 0 : i32
    %c0_i32_0 = arith.constant 0 : i32
    %c0_i32_1 = arith.constant 0 : i32
    return %c0_i32, %c0_i32_0 : i32, i32
  }
  func.func @transform_6(%arg0: i32) -> (i32, i32) {
    %c0_i32 = arith.constant 0 : i32
    %c0_i32_0 = arith.constant 0 : i32
    %c0_i32_1 = arith.constant 0 : i32
    return %c0_i32, %c0_i32_0 : i32, i32
  }
  func.func @transform_7(%arg0: i32) -> (i32, i32) {
    %c0_i32 = arith.constant 0 : i32
    %c0_i32_0 = arith.constant 0 : i32
    return %c0_i32, %arg0 : i32, i32
  }
  func.func @transform_8(%arg0: i32) -> (i32, i32) {
    %c0_i32 = arith.constant 0 : i32
    %c0_i32_0 = arith.constant 0 : i32
    return %c0_i32, %arg0 : i32, i32
  }
  func.func @transform_9(%arg0: i32) -> (i32, i32) {
    %c0_i32 = arith.constant 0 : i32
    %c0_i32_0 = arith.constant 0 : i32
    return %c0_i32, %arg0 : i32, i32
  }
}

</mosaic_0001>

<bundles_post_ra>
// kernel: sac_policy_forward.1
= control target key start
LH: loop header
LB: loop body
LE: loop exit
PB: predicated region body
PF: predicated region fallthrough
CT: control target
= control target key end

     0   :  { %v617_v5 = vmov 0.0   ;;  %v618_v6 = vmov 0   ;;  %vm64_vm0 = vcmask 130048   ;;  %s780_s0 = inlined_call_operand.vmem [shape: f32[16,256], index: 0, kind: input, shape index: {}]   ;;  %s781_s1 = inlined_call_operand.vmem [shape: f32[32,16], index: 1, kind: input, shape index: {}]   ;;  %s782_s2 = inlined_call_operand.vmem [shape: f32[32,1], index: 2, kind: input, shape index: {}]   ;;  %s783_s3 = inlined_call_operand.vmem [shape: f32[32,32], index: 3, kind: input, shape index: {}]   ;;  %s784_s4 = inlined_call_operand.vmem [shape: f32[32,1], index: 4, kind: input, shape index: {}]   ;;  %s785_s5 = inlined_call_operand.vmem [shape: f32[8,32], index: 5, kind: input, shape index: {}]   ;;  %s786_s6 = inlined_call_operand.vmem [shape: f32[8,1], index: 6, kind: input, shape index: {}]   ;;  %s787_s7 = inlined_call_operand.vmem [shape: f32[4,256], index: 7, kind: input, shape index: {}]   ;;  %s788_s8 = inlined_call_operand.hbm [shape: f32[4,256], index: 8, kind: output, shape index: {0}]   ;;  %s789_s9 = inlined_call_operand.vmem [shape: f32[1,256], index: 9, kind: output, shape index: {1}]  }
   0x1   :  { %v33_v0 = vld [vmem:[%s780_s0 + $0x8] sm:$0xff]  ;;  %v35_v1 = vld [vmem:[%s780_s0 + $0x18] sm:$0xff]  ;;  %v32_v2 = vld [vmem:[%s780_s0] sm:$0xff]  ;;  %141 = vmatprep.mubr.f32.mxu0 %v617_v5  ;;  %566 = vset.pattern.permute.xlu0 %v618_v6 }
   0x2   :  { %v542_v3 = vpack.c.bf16 %v35_v1, %v33_v0  ;;  %v34_v4 = vld [vmem:[%s780_s0 + $0x10] sm:$0xff]  ;;  %v40_v8 = vld [vmem:[%s782_s2] sm:$0xff]  ;;  %567 = vset.pattern.permute.xlu1 %v618_v6  ;;  %279 = vmatprep.mubr.f32.mxu1 %v617_v5  ;;  %v41_v11 = vld [vmem:[%s782_s2 + $0x8] sm:$0xff] }
   0x3   :  { %v544_v7 = vpack.c.bf16 %v34_v4, %v32_v2  ;;  %46 = vperm.xlu0 %566, %v40_v8   ;;  %v42_v9 = vld [vmem:[%s782_s2 + $0x10] sm:$0xff]  ;;  %v36_v10 = vld [vmem:[%s781_s1] sm:$0xff]  ;;  %v43_v12 = vld [vmem:[%s782_s2 + $0x18] sm:$0xff] }
   0x4   :  { %543 = vmatprep.subr.bf16.mxu0 %v542_v3  ;;  %56 = vperm.xlu1 %567, %v42_v9  }
   0x5   :  { %545 = vmatpush1.bf16.msra.mxu0 %v544_v7 }
   0x6   :  { %15 = vsyncpa [#allocation3], 0  ;;  %v37_v13 = vld [vmem:[%s781_s1 + $0x8] sm:$0xff]  ;;  %v178_v14 = vld [vmem:[%s784_s4] sm:$0xff]  ;;  %vm202_vm1 = vcmask 261120  }
   0x7   :  { %51 = vperm.xlu0 %566, %v41_v11   ;;  %v179_v15 = vld [vmem:[%s784_s4 + $0x8] sm:$0xff]  ;;  %v38_v16 = vld [vmem:[%s781_s1 + $0x10] sm:$0xff]  ;;  %v181_v18 = vld [vmem:[%s784_s4 + $0x18] sm:$0xff] }
   0x8   :  { %532 = vmatmul.mubr.msk.f32.vlgmr.msra.gmra.mrb[0].mxu0 %vm64_vm0, %v36_v10  ;;  %61 = vperm.xlu1 %567, %v43_v12   ;;  %v180_v17 = vld [vmem:[%s784_s4 + $0x10] sm:$0xff]  ;;  %v39_v19 = vld [vmem:[%s781_s1 + $0x18] sm:$0xff]  ;;  %v313_v20 = vld [vmem:[%s786_s6] sm:$0xff] }
   0x9   :  { %147 = vmatprep.mubr.f32.mxu0 %v617_v5  ;;  %v174_v53 = vld [vmem:[%s783_s3] sm:$0xff]  ;;  %v175_v54 = vld [vmem:[%s783_s3 + $0x8] sm:$0xff]  ;;  %v176_v55 = vld [vmem:[%s783_s3 + $0x10] sm:$0xff] }
   0xa   :  { %v177_v56 = vld [vmem:[%s783_s3 + $0x18] sm:$0xff] }
   0xb   :  { %184 = vperm.xlu0 %566, %v178_v14  }
   0xc   :  { %533 = vmatmul.mubr.msk.f32.gmra.mrb[2].mxu0 %vm64_vm0, %v37_v13  ;;  %189 = vperm.xlu1 %567, %v179_v15  }
   0xd   :  { %153 = vmatprep.mubr.f32.mxu0 %v617_v5 }
   0xf   :  { %194 = vperm.xlu0 %566, %v180_v17  }
  0x10   :  { %534 = vmatmul.mubr.msk.f32.gmra.mrb[4].mxu0 %vm64_vm0, %v38_v16  ;;  %199 = vperm.xlu1 %567, %v181_v18  }
  0x11   :  { %159 = vmatprep.mubr.f32.mxu0 %v617_v5 }
  0x13   :  { %316 = vperm.xlu0 %566, %v313_v20  }
  0x14   :  { %535 = vmatmul.mubr.msk.f32.gmra.mrb[6].mxu0 %vm64_vm0, %v39_v19 }
  0x15   :  { %386 = vmatprep.mubr.f32.mxu0 %v617_v5 }
  0x82   :  { %v47_v21 = vpop.permute.xlu0 %46 }
  0x83   :  { %v57_v30 = vpop.permute.xlu1 %56 }
  0x86   :  { %v52_v25 = vpop.permute.xlu0 %51 }
  0x87   :  { %v62_v41 = vpop.permute.xlu1 %61 }
  0x8a   :  { %v185_v59 = vpop.permute.xlu0 %184 }
  0x8b   :  { %v190_v61 = vpop.permute.xlu1 %189 }
  0x8e   :  { %v195_v10 = vpop.permute.xlu0 %194 }
  0x8f   :  { %v200_v13 = vpop.permute.xlu1 %199 }
  0xdb   :  { %v143_v22 = vpop.f32.mrb[0].mxu0 }
  0xdc   :  { %v145_v23 = vpop.f32.mrb[1].mxu0  ;;  %v144_v24 = vadd.f32 %v143_v22, %v47_v21 }
  0xdd   :  { %v146_v26 = vadd.f32 %v145_v23, %v47_v21 }
  0xde   :  { %v166_v32 = vmax.f32 %v144_v24, 0.0 }
  0xdf   :  { %v149_v27 = vpop.f32.mrb[2].mxu0  ;;  %v167_v34 = vmax.f32 %v146_v26, 0.0  ;;  %v317_v26 = vpop.permute.xlu0 %316 }
  0xe0   :  { %v150_v28 = vadd.f32 %v149_v27, %v52_v25  ;;  %v151_v29 = vpop.f32.mrb[3].mxu0 }
  0xe1   :  { %v152_v31 = vadd.f32 %v151_v29, %v52_v25  ;;  %v312_v25 = vld [vmem:[%s785_s5] sm:$0xff] }
  0xe2   :  { %v168_v33 = vmax.f32 %v150_v28, 0.0 }
  0xe3   :  { %v169_v35 = vmax.f32 %v152_v31, 0.0  ;;  %v155_v36 = vpop.f32.mrb[4].mxu0 }
  0xe4   :  { %v157_v37 = vpop.f32.mrb[5].mxu0  ;;  %v548_v38 = vpack.c.bf16 %v168_v33, %v166_v32  ;;  %v156_v40 = vadd.f32 %v155_v36, %v57_v30 }
  0xe5   :  { %v546_v39 = vpack.c.bf16 %v169_v35, %v167_v34  ;;  %v158_v42 = vadd.f32 %v157_v37, %v57_v30 }
  0xe6   :  { %v170_v47 = vmax.f32 %v156_v40, 0.0 }
  0xe7   :  { %v161_v43 = vpop.f32.mrb[6].mxu0  ;;  %547 = vmatprep.subr.bf16.mxu1 %v546_v39  ;;  %v171_v49 = vmax.f32 %v158_v42, 0.0 }
  0xe8   :  { %v162_v44 = vadd.f32 %v161_v43, %v62_v41  ;;  %v163_v45 = vpop.f32.mrb[7].mxu0  ;;  %549 = vmatpush1.bf16.msra.mxu1 %v548_v38 }
  0xe9   :  { %v164_v46 = vadd.f32 %v163_v45, %v62_v41  ;;  %v758_v45 = vld [vmem:[%s787_s7] sm:$0xff]  ;;  %s619_s7 = smov [#allocation2]  }
  0xea   :  { %v172_v48 = vmax.f32 %v162_v44, 0.0  ;;  %s520_s26 = sshll.u32 %s619_s7, 4  ;;  %s521_s26 = int_to_ptr.vmem [resolvable:$true] %s520_s26 }
  0xeb   :  { %v173_v50 = vmax.f32 %v164_v46, 0.0  ;;  %s593_s27 = scalar_lea.vmem %s521_s26, 128  ;;  %p598_p1 = scmp.lt.s32.totalorder %s521_s26, %s521_s26 }
  0xec   :  { %v552_v51 = vpack.c.bf16 %v172_v48, %v170_v47  ;;  %p594_p0 = scmp.ne.s32.totalorder %s521_s26, %s593_s27  ;;  %p599_p2 = scmp.lt.s32.totalorder %s593_s27, %s593_s27 }
  0xed   :  { %v550_v52 = vpack.c.bf16 %v173_v50, %v171_v49 }
  0xee   :  { %p600_p3 = por %p599_p2, %p598_p1 }
  0xef   :  { %551 = vmatprep.subr.bf16.mxu1 %v550_v52  ;;  %v425_v52 = vcombine.low %v758_v45, %v758_v45 }
  0xf0   :  { %553 = vmatpush1.bf16.msra.mxu1 %v552_v51  ;;  %p601_p4 = pnand %p600_p3, %p594_p0 }
  0xf3   :  { %536 = vmatmul.mubr.msk.f32.vlgmr.msra.gmra.mrb[0].mxu1 %vm202_vm1, %v174_v53 }
  0xf4   :  { %285 = vmatprep.mubr.f32.mxu1 %v617_v5 }
  0xf7   :  { %537 = vmatmul.mubr.msk.f32.gmra.mrb[2].mxu1 %vm202_vm1, %v175_v54 }
  0xf8   :  { %291 = vmatprep.mubr.f32.mxu1 %v617_v5 }
  0xfb   :  { %538 = vmatmul.mubr.msk.f32.gmra.mrb[4].mxu1 %vm202_vm1, %v176_v55 }
  0xfc   :  { %297 = vmatprep.mubr.f32.mxu1 %v617_v5 }
  0xff   :  { %539 = vmatmul.mubr.msk.f32.gmra.mrb[6].mxu1 %vm202_vm1, %v177_v56 }
 0x1c6   :  { %v281_v57 = vpop.f32.mrb[0].mxu1 }
 0x1c7   :  { %v283_v58 = vpop.f32.mrb[1].mxu1  ;;  %v282_v60 = vadd.f32 %v281_v57, %v185_v59 }
 0x1c8   :  { %v284_v62 = vadd.f32 %v283_v58, %v185_v59 }
 0x1c9   :  { %v304_v3 = vmax.f32 %v282_v60, 0.0 }
 0x1ca   :  { %v287_v63 = vpop.f32.mrb[2].mxu1  ;;  %v305_v6 = vmax.f32 %v284_v62, 0.0 }
 0x1cb   :  { %v288_v0 = vadd.f32 %v287_v63, %v190_v61  ;;  %v289_v1 = vpop.f32.mrb[3].mxu1 }
 0x1cc   :  { %v290_v2 = vadd.f32 %v289_v1, %v190_v61 }
 0x1cd   :  { %v306_v4 = vmax.f32 %v288_v0, 0.0 }
 0x1ce   :  { %v307_v5 = vmax.f32 %v290_v2, 0.0  ;;  %v293_v7 = vpop.f32.mrb[4].mxu1 }
 0x1cf   :  { %v556_v8 = vpack.c.bf16 %v306_v4, %v304_v3  ;;  %v295_v9 = vpop.f32.mrb[5].mxu1  ;;  %v294_v12 = vadd.f32 %v293_v7, %v195_v10 }
 0x1d0   :  { %v554_v11 = vpack.c.bf16 %v307_v5, %v305_v6  ;;  %v296_v14 = vadd.f32 %v295_v9, %v195_v10 }
 0x1d1   :  { %v308_v19 = vmax.f32 %v294_v12, 0.0 }
 0x1d2   :  { %v299_v15 = vpop.f32.mrb[6].mxu1  ;;  %555 = vmatprep.subr.bf16.mxu0 %v554_v11  ;;  %v309_v21 = vmax.f32 %v296_v14, 0.0 }
 0x1d3   :  { %v300_v16 = vadd.f32 %v299_v15, %v200_v13  ;;  %v301_v17 = vpop.f32.mrb[7].mxu1  ;;  %557 = vmatpush1.bf16.msra.mxu0 %v556_v8 }
 0x1d4   :  { %v302_v18 = vadd.f32 %v301_v17, %v200_v13 }
 0x1d5   :  { %v310_v20 = vmax.f32 %v300_v16, 0.0 }
 0x1d6   :  { %v311_v22 = vmax.f32 %v302_v18, 0.0 }
 0x1d7   :  { %v560_v23 = vpack.c.bf16 %v310_v20, %v308_v19 }
 0x1d8   :  { %v558_v24 = vpack.c.bf16 %v311_v22, %v309_v21 }
 0x1da   :  { %559 = vmatprep.subr.bf16.mxu0 %v558_v24 }
 0x1db   :  { %561 = vmatpush1.bf16.msra.mxu0 %v560_v23 }
 0x1de   :  { %540 = vmatmul.mubr.msk.f32.vlgmr.msra.gmra.mrb[8].mxu0 %vm202_vm1, %v312_v25 }
 0x2b1   :  { %v388_v27 = vpop.f32.mrb[8].mxu0 }
 0x2b2   :  { %v389_v28 = vadd.f32 %v388_v27, %v317_v26  ;;  %v390_v29 = vpop.f32.mrb[9].mxu0 }
 0x2b3   :  { %v391_v30 = vadd.f32 %v390_v29, %v317_v26 }
 0x2b4   :  { %v393_v31 = vand.u32 2147483647, %v389_v28  ;;  %v419_v53 = vmax.f32 %v389_v28, 0.0 }
 0x2b5   :  { %v394_v32 = vand.u32 2147483647, %v391_v30  ;;  %v420_v57 = vmax.f32 %v391_v30, 0.0 }
 0x2b6   :  { %v395_v33 = vsub.f32 0.0, %v393_v31 }
 0x2b7   :  { %v396_v34 = vsub.f32 0.0, %v394_v32 }
 0x2b8   :  { %v397_v35 = vmul.f32 1.442695, %v395_v33 }
 0x2b9   :  { %v399_v36 = vmul.f32 1.442695, %v396_v34 }
 0x2ba   :  { %569 = vpow2.f32 %v397_v35 }
 0x2bb   :  { %571 = vpow2.f32 %v399_v36 }
 0x2c4   :  { %v570_v37 = vpop.eup %569 }
 0x2c5   :  { %v572_v38 = vpop.eup %571  ;;  %v401_v39 = vadd.f32 1.0, %v570_v37  ;;  %v404_v41 = vmul.f32 -0.5, %v570_v37  ;;  %v407_v44 = vand.u32 2147483647, %v570_v37 }
 0x2c6   :  { %v410_v40 = vadd.f32 1.0, %v572_v38  ;;  %v413_v42 = vmul.f32 -0.5, %v572_v38  ;;  %v416_v47 = vand.u32 2147483647, %v572_v38 }
 0x2c7   :  { %573 = vlog2.f32 %v401_v39  ;;  %v405_v43 = vadd.f32 1.0, %v404_v41  ;;  %vm408_vm2 = vcmp.lt.f32.partialorder %v407_v44, 0.0004427343 }
 0x2c8   :  { %575 = vlog2.f32 %v410_v40  ;;  %v414_v46 = vadd.f32 1.0, %v413_v42  ;;  %vm417_vm3 = vcmp.lt.f32.partialorder %v416_v47, 0.0004427343 }
 0x2c9   :  { %v406_v51 = vmul.f32 %v570_v37, %v405_v43 }
 0x2ca   :  { %v415_v55 = vmul.f32 %v572_v38, %v414_v46 }
 0x2d1   :  { %v574_v48 = vpop.eup %573 }
 0x2d2   :  { %v576_v49 = vpop.eup %575  ;;  %v403_v50 = vmul.f32 0.6931472, %v574_v48 }
 0x2d3   :  { %v412_v54 = vmul.f32 0.6931472, %v576_v49 }
 0x2d4   :  { %v409_v56 = vsel %vm408_vm2, %v406_v51, %v403_v50 }
 0x2d5   :  { %v421_v58 = vadd.f32 %v419_v53, %v409_v56  ;;  %v418_v59 = vsel %vm417_vm3, %v415_v55, %v412_v54 }
 0x2d6   :  { %v422_v60 = vadd.f32 %v420_v57, %v418_v59 }
 0x2d7   :  { %v427_v61 = vmul.f32 %v425_v52, %v421_v58  ;;  %577 = vlog2.f32 %v421_v58 }
 0x2d8   :  { %v428_v62 = vmul.f32 %v758_v45, %v422_v60  ;;  %579 = vlog2.f32 %v422_v60 }
 0x2d9   :  { %v431_v63 = vrot.slane %v427_v61, 4 }
 0x2da   :  { %v432_v0 = vrot.slane %v428_v62, 4 }
 0x2db   :  { %v435_v1 = vadd.f32 %v431_v63, %v389_v28 }
 0x2dc   :  { %v436_v2 = vadd.f32 %v432_v0, %v391_v30 }
 0x2dd   :  { %581 = vtanh.f32 %v435_v1 }
 0x2de   :  { %583 = vtanh.f32 %v436_v2 }
 0x2e1   :  { %v578_v3 = vpop.eup %577 }
 0x2e2   :  { %v580_v4 = vpop.eup %579  ;;  %v440_v6 = vmul.f32 0.6931472, %v578_v3 }
 0x2e3   :  { %v442_v5 = vmul.f32 0.6931472, %v580_v4 }
 0x2e5   :  { %v445_v7 = vcombine.high %v440_v6, %v442_v5 }
 0x2e7   :  { %v582_v8 = vpop.eup %581 }
 0x2e8   :  { %v584_v9 = vpop.eup %583  ;;  %585 = vtanh.f32 %v582_v8 }
 0x2e9   :  { %587 = vtanh.f32 %v584_v9  ;;  %v470_v10 = vcombine.low %v582_v8, %v584_v9 }
 0x2eb   :  { %472 = vst [vmem:[#allocation2] sm:$0xff] %v470_v10 }
 0x2ec   :  { %604 = shalt.err (!%p601_p4)
}
 0x2ed   :  { %s605_s30 = scalar_lea.hbm %s788_s8, 128 }
 0x2ee   :  { %p606_p5 = scmp.ne.s32.totalorder %s788_s8, %s605_s30  ;;  %p609_p6 = scmp.lt.u32.totalorder %s605_s30, %s788_s8 }
 0x2f0   :  { %p611_p7 = pnand %p609_p6, %p606_p5 }
 0x2f2   :  { %614 = shalt.err (!%p611_p7)
}
 0x2f3   :  { %523 = dma.vmem_to_hbm [thread:$0]  %s521_s26, 128, %s788_s8, [#allocation3]   ;;  %v586_v11 = vpop.eup %585  ;;  %v437_v19 = vmul.f32 -0.5, %v758_v45  ;;  %vm476_vm4 = vcmask 1043456   ;;  %v620_v37 = vmov 1966171168   ;;  %v497_v39 = vlaneseq }
 0x2f4   :  { %v588_v12 = vpop.eup %587  ;;  %v453_v13 = vmul.f32 %v586_v11, %v586_v11  ;;  %v495_v38 = vunpack.c.l.s4 %v620_v37 }
 0x2f5   :  { %v454_v14 = vmul.f32 %v588_v12, %v588_v12  ;;  %v438_v20 = vmul.f32 %v437_v19, %v758_v45  ;;  %v498_v45 = vshrl.u32 %v497_v39, 7  ;;  %vm511_vm5 = vcmp.lt.s32.totalorder %v497_v39, 256 }
 0x2f6   :  { %v455_v15 = vsub.f32 1.0, %v453_v13  ;;  %v496_v44 = vunpack.c.0.s8 %v495_v38 }
 0x2f7   :  { %v456_v16 = vsub.f32 1.0, %v454_v14  ;;  %v447_v22 = vsub.f32 %v438_v20, %v445_v7 }
 0x2f8   :  { %v457_v17 = vadd.f32 1e-07, %v455_v15  ;;  %v499_v49 = vsub.s32 %v496_v44, %v498_v45 }
 0x2f9   :  { %v458_v18 = vadd.f32 1e-07, %v456_v16  ;;  %v541_v26 = vadd.f32 -0.9189385, %v447_v22 }
 0x2fa   :  { %589 = vlog2.f32 %v457_v17 }
 0x2fb   :  { %591 = vlog2.f32 %v458_v18 }
 0x304   :  { %v590_v21 = vpop.eup %589 }
 0x305   :  { %v592_v23 = vpop.eup %591  ;;  %v460_v24 = vmul.f32 0.6931472, %v590_v21 }
 0x306   :  { %v462_v25 = vmul.f32 0.6931472, %v592_v23 }
 0x308   :  { %v465_v27 = vcombine.low %v460_v24, %v462_v25 }
 0x30a   :  { %v467_v28 = vsub.f32 %v541_v26, %v465_v27 }
 0x30c   :  { %v474_v29 = vcombine.high %v467_v28, %v467_v28  ;;  %v477_v30 = vsel %vm476_vm4, %v467_v28, 0.0 }
 0x30d   :  { %v478_v31 = vrot.slane %v477_v30, 4 }
 0x30e   :  { %v484_v32 = vsel %vm476_vm4, %v474_v29, 0.0 }
 0x30f   :  { %v479_v33 = vadd.f32 %v478_v31, %v477_v30  ;;  %v485_v34 = vrot.slane %v484_v32, 4 }
 0x311   :  { %v480_v35 = vrot.slane %v479_v33, 2  ;;  %v486_v36 = vadd.f32 %v485_v34, %v484_v32 }
 0x313   :  { %v481_v40 = vadd.f32 %v480_v35, %v479_v33  ;;  %v487_v41 = vrot.slane %v486_v36, 2 }
 0x315   :  { %v482_v42 = vrot.slane %v481_v40, 1  ;;  %v488_v43 = vadd.f32 %v487_v41, %v486_v36 }
 0x317   :  { %v489_v46 = vrot.slane %v488_v43, 1  ;;  %v483_v47 = vadd.f32 %v482_v42, %v481_v40 }
 0x319   :  { %v490_v48 = vadd.f32 %v489_v46, %v488_v43 }
 0x31b   :  { %v493_v50 = vcombine.low %v483_v47, %v490_v48 }
 0x31d   :  { %v500_v51 = vrot.slane %v493_v50, %v499_v49 }
 0x31f   :  { %v507_v52 = vrot.slane %v500_v51, %v499_v49 }
 0x321   :  { %513 = vst.msk [vmem:[%s789_s9] sm:$0x3] %vm511_vm5, %v507_v52 }
 0x322   :  { %615 = dma.done.wait [#allocation3], 128  }
 0x323   :  { %616 = vsyncadd [#allocation3], 4294967168 }
 0x324   :  { %531 = vsyncpa [#allocation3], 1 }

</bundles_post_ra>
